<compile_context>
chip_gen: v7x
topology: tpu7x:2x2x1
jax: 0.10.0
libtpu: 0.0.40
codegen_flags: <defaults>
</compile_context>

<pallas_src>
import functools

import jax
import jax.numpy as jnp
import numpy as np
from jax.experimental import pallas as pl
from jax.experimental.pallas import tpu as pltpu


def _round_up(x, m):
    return (x + m - 1) // m * m


def _pick_batch_tile(batch, cap=1024):
    """Batch tile: multiple of 8, <= cap, batch_pad within one tile of batch.

    Once batch > 512, force at least 2 grid steps so the "parallel" batch axis
    can shard across v7x's two TensorCores (neutral on 1-TC v5e/v6e).
    """
    n_tiles = max(1, -(-batch // cap))
    if batch > 512:
        n_tiles = max(n_tiles, 2)
    return _round_up(-(-batch // n_tiles), 8)


def _mlp_kernel(x_ref, w_ref, b_ref, o_ref, *, num_layers, feat_k):
    """Fused MLP over one (TB, feat_k) batch tile.

    x_ref: (TB, feat_k)   activations at their natural (8-aligned) width
    w_ref: (L, P, P)      packed, zero-padded weights (in, out) per layer
    b_ref: (L, 1, P)      packed, zero-padded biases
    o_ref: (TB, P)        lane-dense padded output slab
    """
    compute_dtype = w_ref.dtype

    # Layer 0: contract only over the true feature width (static 8-aligned slice).
    w0 = w_ref[0][:feat_k, :]
    h = jnp.dot(x_ref[...].astype(compute_dtype), w0,
                preferred_element_type=jnp.float32)
    h = h + b_ref[0].astype(jnp.float32)
    if num_layers > 1:
        h = jnp.tanh(h)

    for l in range(1, num_layers):                  # static unroll at trace time
        h = jnp.dot(h.astype(compute_dtype), w_ref[l],
                    preferred_element_type=jnp.float32)
        h = h + b_ref[l].astype(jnp.float32)
        if l < num_layers - 1:
            h = jnp.tanh(h)

    o_ref[...] = h.astype(o_ref.dtype)


def pack_estimator_params(params, dtype=jnp.float32):
    """Pack per-layer (W (in,out), b (out,)) into lane-dense zero-padded buffers.

    Returns:
      w_pack: (L, P, P), zeros outside the true (in, out) block of each layer.
      b_pack: (L, 1, P), zeros outside the true out width.
    P = max over all layer dims, rounded up to a multiple of 128.  Pass
    dtype=jnp.bfloat16 for the reduced-HBM-traffic I/O mode (v6e/v5e).
    """
    dims = [params[0][0].shape[0]] + [w.shape[1] for w, _ in params]
    P = max(_round_up(int(d), 128) for d in dims)
    L = len(params)
    w_pack = np.zeros((L, P, P), np.float32)
    b_pack = np.zeros((L, 1, P), np.float32)
    for l, (w, b) in enumerate(params):
        w = np.asarray(w, np.float32)
        b = np.asarray(b, np.float32)
        w_pack[l, : w.shape[0], : w.shape[1]] = w
        b_pack[l, 0, : b.shape[0]] = b
    return jnp.asarray(w_pack, dtype), jnp.asarray(b_pack, dtype)


def estimator_network_forward(s, w_pack, b_pack, *, action_num,
                              small_batch_fallback=0,
                              out_dtype=jnp.float32):
    """Pallas-backed forward pass of EstimatorNetwork.

    Args:
      s:        (batch, *state_shape) tensor.
      w_pack:   (L, P, P) packed weights from pack_estimator_params.
      b_pack:   (L, 1, P) packed biases.
      action_num: number of actions (true final output width).
      small_batch_fallback: if batch <= this, skip pallas_call and let XLA fuse
        the tiny MLP (dispatch + DMA setup dominates at a few-dozen rows).
      out_dtype: output dtype (jnp.bfloat16 halves output-slab HBM traffic).

    Returns:
      (batch, action_num) array of action values.
    """
    batch = s.shape[0]
    feat_dim = int(np.prod(s.shape[1:]))
    L, _, P = w_pack.shape
    compute_dtype = w_pack.dtype

    x = s.reshape(batch, feat_dim).astype(compute_dtype)    # nn.Flatten()

    # Only align the feature width to the sublane granule (8); no 128-lane pad.
    feat_k = _round_up(feat_dim, 8)
    if feat_k != feat_dim:
        x = jnp.pad(x, ((0, 0), (0, feat_k - feat_dim)))

    if batch <= small_batch_fallback:
        # Tiny-batch fast path: pure JAX, fused by XLA; same padded math.
        h = jnp.dot(x, w_pack[0, :feat_k, :],
                    preferred_element_type=jnp.float32) + b_pack[0, 0]
        for l in range(1, L):
            h = jnp.tanh(h)
            h = jnp.dot(h.astype(compute_dtype), w_pack[l],
                        preferred_element_type=jnp.float32) + b_pack[l, 0]
        return h[:, :action_num].astype(out_dtype)

    TB = _pick_batch_tile(batch)
    batch_pad = _round_up(batch, TB)
    if batch_pad != batch:                     # skip the copy for exact multiples
        x = jnp.pad(x, ((0, batch_pad - batch), (0, 0)))

    kernel = functools.partial(_mlp_kernel, num_layers=L, feat_k=feat_k)

    in_bytes = jnp.dtype(compute_dtype).itemsize
    cost = pl.CostEstimate(
        flops=2 * batch_pad * (feat_k * P + (L - 1) * P * P),
        transcendentals=batch_pad * P * (L - 1),
        bytes_accessed=(batch_pad * feat_k * in_bytes
                        + batch_pad * P * jnp.dtype(out_dtype).itemsize
                        + int(w_pack.size) * in_bytes
                        + int(b_pack.size) * in_bytes),
    )

    out_pad = pl.pallas_call(
        kernel,
        out_shape=jax.ShapeDtypeStruct((batch_pad, P), out_dtype),
        grid_spec=pltpu.PrefetchScalarGridSpec(
            num_scalar_prefetch=0,
            grid=(batch_pad // TB,),
            in_specs=[
                pl.BlockSpec((TB, feat_k), lambda i: (i, 0)),     # x tile (unpadded lanes)
                pl.BlockSpec((L, P, P), lambda i: (0, 0, 0)),     # weights, VMEM-resident
                pl.BlockSpec((L, 1, P), lambda i: (0, 0, 0)),     # biases, VMEM-resident
            ],
            out_specs=pl.BlockSpec((TB, P), lambda i: (i, 0)),    # lane-dense slab
        ),
        compiler_params=pltpu.CompilerParams(
            dimension_semantics=("parallel",)),
        cost_estimate=cost,
    )(x, w_pack, b_pack)

    # Slice the padded slab back to the true (batch, action_num) result.
    return out_pad[:batch, :action_num]


def init_estimator_params(key, state_shape, mlp_layers, action_num):
    """Deterministic init mirroring nn.Linear's default U(-1/sqrt(in), 1/sqrt(in)).

    Weights are stored transposed relative to PyTorch: shape (in, out), so the
    kernel computes y = x @ W + b (== x @ W_torch.T + b).
    """
    layer_dims = [int(np.prod(state_shape))] + list(mlp_layers) + [action_num]
    params = []
    for i in range(len(layer_dims) - 1):
        fan_in, fan_out = layer_dims[i], layer_dims[i + 1]
        key, wk, bk = jax.random.split(key, 3)
        bound = 1.0 / np.sqrt(fan_in)
        w = jax.random.uniform(wk, (fan_in, fan_out), jnp.float32, -bound, bound)
        b = jax.random.uniform(bk, (fan_out,), jnp.float32, -bound, bound)
        params.append((w, b))
    return params


def _reference_forward(s, params):
    """Pure-JAX reference (Flatten -> [Linear,Tanh]* -> Linear), unpadded."""
    x = s.reshape(s.shape[0], -1).astype(jnp.float32)
    *hidden, last = params
    for w, b in hidden:
        x = jnp.tanh(x @ w + b)
    w, b = last
    return x @ w + b


if __name__ == "__main__":
    # Shapes consistent with the module's forward:
    #   state_shape = [4, 16]  -> flattened feature dim 64
    #   mlp_layers  = [32, 32]
    #   action_num  = 2
    action_num = 2
    state_shape = [4, 16]
    mlp_layers = [32, 32]

    key = jax.random.PRNGKey(0)
    key, pkey, skey1, skey2 = jax.random.split(key, 4)

    params = init_estimator_params(pkey, state_shape, mlp_layers, action_num)
    w_pack, b_pack = pack_estimator_params(params)   # pack/pad ONCE, not per call

    fwd = jax.jit(functools.partial(estimator_network_forward,
                                    action_num=action_num))

    # 1) Small batch through the Pallas kernel path.
    s_small = jax.random.normal(skey1, (4, *state_shape), dtype=jnp.float32)
    out_small = jax.block_until_ready(fwd(s_small, w_pack, b_pack))
    ref_small = _reference_forward(s_small, params)
    np.testing.assert_allclose(np.asarray(out_small), np.asarray(ref_small),
                               rtol=1e-5, atol=1e-5)
    assert out_small.shape == (4, action_num)

    # 2) Batch not a multiple of 8 -> exercises adaptive TB + minimal row pad.
    s_big = jax.random.normal(skey2, (260, *state_shape), dtype=jnp.float32)
    out_big = jax.block_until_ready(fwd(s_big, w_pack, b_pack))
    ref_big = _reference_forward(s_big, params)
    np.testing.assert_allclose(np.asarray(out_big), np.asarray(ref_big),
                               rtol=1e-5, atol=1e-5)

    # 3) Tiny-batch fallback path (pure-JAX fusion), same numerics.
    out_fb = estimator_network_forward(s_small, w_pack, b_pack,
                                       action_num=action_num,
                                       small_batch_fallback=64)
    np.testing.assert_allclose(np.asarray(out_fb), np.asarray(ref_small),
                               rtol=1e-5, atol=1e-5)

    print("KERNEL_OK")
</pallas_src>

<mosaic_0001>
module attributes {stable_mosaic.version = 11 : i64} {
  func.func @_mlp_kernel(%arg0: i32, %arg1: memref<8x64xf32, #tpu.memory_space<vmem>>, %arg2: memref<3x128x128xf32, #tpu.memory_space<vmem>>, %arg3: memref<3x1x128xf32, #tpu.memory_space<vmem>>, %arg4: memref<8x128xf32, #tpu.memory_space<vmem>>) attributes {dimension_semantics = [#tpu.dimension_semantics<parallel>], iteration_bounds = array<i64: 1>, scalar_prefetch = 0 : i64, scratch_operands = 0 : i64, tpu.core_type = #tpu.core_type<tc>, window_params = [{transform_indices = @transform_0, window_bounds = array<i64: 8, 64>}, {pipeline_mode = #tpu.pipeline_mode<synchronous>, transform_indices = @transform_1, window_bounds = array<i64: 3, 128, 128>}, {pipeline_mode = #tpu.pipeline_mode<synchronous>, transform_indices = @transform_2, window_bounds = array<i64: 3, 1, 128>}, {transform_indices = @transform_3, window_bounds = array<i64: 8, 128>}]} {
    %c0 = arith.constant 0 : index
    %c0_0 = arith.constant 0 : index
    %c0_1 = arith.constant 0 : index
    %0 = vector.load %arg2[%c0, %c0_0, %c0_1] : memref<3x128x128xf32, #tpu.memory_space<vmem>>, vector<1x128x128xf32>
    %1 = vector.shape_cast %0 : vector<1x128x128xf32> to vector<128x128xf32>
    %2 = vector.extract_strided_slice %1 {offsets = [0, 0], sizes = [64, 128], strides = [1, 1]} : vector<128x128xf32> to vector<64x128xf32>
    %c0_2 = arith.constant 0 : index
    %c0_3 = arith.constant 0 : index
    %3 = vector.load %arg1[%c0_2, %c0_3] : memref<8x64xf32, #tpu.memory_space<vmem>>, vector<8x64xf32>
    %cst = arith.constant dense<0.000000e+00> : vector<8x128xf32>
    %4 = tpu.matmul %3, %2, %cst {dimension_numbers = #tpu.dot_dimension_numbers<[1], [0], [0], [1], [0, 0, 1, 1], [], []>} : vector<8x64xf32>, vector<64x128xf32>, vector<8x128xf32> -> vector<8x128xf32>
    %c0_4 = arith.constant 0 : index
    %c0_5 = arith.constant 0 : index
    %c0_6 = arith.constant 0 : index
    %5 = vector.load %arg3[%c0_4, %c0_5, %c0_6] : memref<3x1x128xf32, #tpu.memory_space<vmem>>, vector<1x1x128xf32>
    %6 = vector.shape_cast %5 : vector<1x1x128xf32> to vector<1x128xf32>
    %7 = vector.broadcast %6 : vector<1x128xf32> to vector<8x128xf32>
    %8 = arith.addf %4, %7 : vector<8x128xf32>
    %9 = math.tanh %8 : vector<8x128xf32>
    %c1 = arith.constant 1 : index
    %c0_7 = arith.constant 0 : index
    %c0_8 = arith.constant 0 : index
    %10 = vector.load %arg2[%c1, %c0_7, %c0_8] : memref<3x128x128xf32, #tpu.memory_space<vmem>>, vector<1x128x128xf32>
    %11 = vector.shape_cast %10 : vector<1x128x128xf32> to vector<128x128xf32>
    %cst_9 = arith.constant dense<0.000000e+00> : vector<8x128xf32>
    %12 = tpu.matmul %9, %11, %cst_9 {dimension_numbers = #tpu.dot_dimension_numbers<[1], [0], [0], [1], [0, 0, 1, 1], [], []>} : vector<8x128xf32>, vector<128x128xf32>, vector<8x128xf32> -> vector<8x128xf32>
    %c1_10 = arith.constant 1 : index
    %c0_11 = arith.constant 0 : index
    %c0_12 = arith.constant 0 : index
    %13 = vector.load %arg3[%c1_10, %c0_11, %c0_12] : memref<3x1x128xf32, #tpu.memory_space<vmem>>, vector<1x1x128xf32>
    %14 = vector.shape_cast %13 : vector<1x1x128xf32> to vector<1x128xf32>
    %15 = vector.broadcast %14 : vector<1x128xf32> to vector<8x128xf32>
    %16 = arith.addf %12, %15 : vector<8x128xf32>
    %17 = math.tanh %16 : vector<8x128xf32>
    %c2 = arith.constant 2 : index
    %c0_13 = arith.constant 0 : index
    %c0_14 = arith.constant 0 : index
    %18 = vector.load %arg2[%c2, %c0_13, %c0_14] : memref<3x128x128xf32, #tpu.memory_space<vmem>>, vector<1x128x128xf32>
    %19 = vector.shape_cast %18 : vector<1x128x128xf32> to vector<128x128xf32>
    %cst_15 = arith.constant dense<0.000000e+00> : vector<8x128xf32>
    %20 = tpu.matmul %17, %19, %cst_15 {dimension_numbers = #tpu.dot_dimension_numbers<[1], [0], [0], [1], [0, 0, 1, 1], [], []>} : vector<8x128xf32>, vector<128x128xf32>, vector<8x128xf32> -> vector<8x128xf32>
    %c2_16 = arith.constant 2 : index
    %c0_17 = arith.constant 0 : index
    %c0_18 = arith.constant 0 : index
    %21 = vector.load %arg3[%c2_16, %c0_17, %c0_18] : memref<3x1x128xf32, #tpu.memory_space<vmem>>, vector<1x1x128xf32>
    %22 = vector.shape_cast %21 : vector<1x1x128xf32> to vector<1x128xf32>
    %23 = vector.broadcast %22 : vector<1x128xf32> to vector<8x128xf32>
    %24 = arith.addf %20, %23 : vector<8x128xf32>
    %c0_19 = arith.constant 0 : index
    %c0_20 = arith.constant 0 : index
    %25 = vector.load %arg4[%c0_19, %c0_20] : memref<8x128xf32, #tpu.memory_space<vmem>>, vector<8x128xf32>
    tpu.vector_store %arg4[%c0_19, %c0_20], %24 {strides = array<i32>} : memref<8x128xf32, #tpu.memory_space<vmem>>, vector<8x128xf32>,
    return
  }
  func.func @transform_0(%arg0: i32) -> (i32, i32) {
    %c0_i32 = arith.constant 0 : i32
    %c0_i32_0 = arith.constant 0 : i32
    return %arg0, %c0_i32 : i32, i32
  }
  func.func @transform_1(%arg0: i32) -> (i32, i32, i32) {
    %c0_i32 = arith.constant 0 : i32
    %c0_i32_0 = arith.constant 0 : i32
    %c0_i32_1 = arith.constant 0 : i32
    %c0_i32_2 = arith.constant 0 : i32
    return %c0_i32, %c0_i32_0, %c0_i32_1 : i32, i32, i32
  }
  func.func @transform_2(%arg0: i32) -> (i32, i32, i32) {
    %c0_i32 = arith.constant 0 : i32
    %c0_i32_0 = arith.constant 0 : i32
    %c0_i32_1 = arith.constant 0 : i32
    %c0_i32_2 = arith.constant 0 : i32
    return %c0_i32, %c0_i32_0, %c0_i32_1 : i32, i32, i32
  }
  func.func @transform_3(%arg0: i32) -> (i32, i32) {
    %c0_i32 = arith.constant 0 : i32
    %c0_i32_0 = arith.constant 0 : i32
    return %arg0, %c0_i32 : i32, i32
  }
}

</mosaic_0001>

<bundles_post_ra>
// kernel: estimator_network_forward.1
= control target key start
LH: loop header
LB: loop body
LE: loop exit
PB: predicated region body
PF: predicated region fallthrough
CT: control target
= control target key end

     0   :  { %8 = vsyncpa [#allocation3], 0  ;;  %s548_s12 = smov [#allocation2]   ;;  %s624_s0 = inlined_call_operand.vmem [shape: f32[8,64], index: 0, kind: input, shape index: {}]   ;;  %s625_s1 = inlined_call_operand.hbm [shape: f32[3,128,128], index: 1, kind: input, shape index: {}]   ;;  %s626_s2 = inlined_call_operand.vmem [shape: f32[3,1,128], index: 2, kind: input, shape index: {}]   ;;  %s627_s3 = inlined_call_operand.vmem [shape: f32[8,128], index: 3, kind: output, shape index: {}]  }
   0x1   :  { %s16_s13 = sshll.u32 %s548_s12, 4  ;;  %s524_s16 = scalar_lea.hbm %s625_s1, 6144  ;;  %s17_s13 = int_to_ptr.vmem [resolvable:$true] %s16_s13 }
   0x2   :  { %p525_p0 = scmp.ne.s32.totalorder %s625_s1, %s524_s16  ;;  %p528_p1 = scmp.lt.u32.totalorder %s524_s16, %s625_s1 }
   0x4   :  { %p530_p2 = pnand %p528_p1, %p525_p0 }
   0x6   :  { %533 = shalt.err (!%p530_p2)
}
   0x7   :  { %s534_s21 = scalar_lea.vmem %s17_s13, 6144  ;;  %p539_p4 = scmp.lt.s32.totalorder %s17_s13, %s17_s13 }
   0x8   :  { %p535_p3 = scmp.ne.s32.totalorder %s17_s13, %s534_s21  ;;  %p540_p5 = scmp.lt.s32.totalorder %s534_s21, %s534_s21 }
   0xa   :  { %p541_p6 = por %p540_p5, %p539_p4 }
   0xc   :  { %p542_p7 = pnand %p541_p6, %p535_p3 }
   0xe   :  { %545 = shalt.err (!%p542_p7)
}
   0xf   :  { %s549_s22 = smov 128   ;;  %s550_s23 = smov 8  }
  0x10   :  { %22 = dma.hbm_to_vmem [thread:$0]  %s625_s1, 6144, %s17_s13, [#allocation3], %s549_s22, %s549_s22, %s550_s23  }
  0x11   :  { %546 = dma.done.wait [#allocation3], 6144  }
  0x12   :  { %547 = vsyncadd [#allocation3], 4294961152  ;;  %v551_v0 = vmov 0.0|0.0   ;;  %vm552_vm0 = vmmov 0   ;;  %v553_v1 = vmov 0.0   ;;  %v28_v2 = vld [vmem:[#allocation2] sm:$0xff] }
  0x13   :  { %454 = vmatprep.subr.bf16.mxu0 %v551_v0  ;;  %381 = vmatprep.mubr.msk.f32.mxu0 %vm552_vm0, %v553_v1  ;;  %v29_v3 = vld [vmem:[#allocation2 + $0x8] sm:$0xff]  ;;  %v30_v4 = vld [vmem:[#allocation2 + $0x10] sm:$0xff]  ;;  %v31_v6 = vld [vmem:[#allocation2 + $0x18] sm:$0xff]  ;;  %vm44_vm1 = vcmask 523264  }
  0x14   :  { %466 = vmatprep.subr.bf16.mxu1 %v551_v0  ;;  %416 = vmatprep.mubr.msk.f32.mxu1 %vm552_vm0, %v553_v1  ;;  %v455_v5 = vpack.c.bf16 %v29_v3, %v28_v2  ;;  %v458_v7 = vpack.c.bf16 %v31_v6, %v30_v4  ;;  %v120_v8 = vld [vmem:[#allocation2 + $0x80] sm:$0xff]  ;;  %v121_v9 = vld [vmem:[#allocation2 + $0x88] sm:$0xff]  ;;  %v122_v10 = vld [vmem:[#allocation2 + $0x90] sm:$0xff] }
  0x15   :  { %v32_v11 = vld [vmem:[#allocation2 + $0x20] sm:$0xff]  ;;  %v33_v12 = vld [vmem:[#allocation2 + $0x28] sm:$0xff]  ;;  %v467_v13 = vpack.c.bf16 %v121_v9, %v120_v8  ;;  %v123_v14 = vld [vmem:[#allocation2 + $0x98] sm:$0xff] }
  0x16   :  { %456 = vmatpush3.bf16.msra.mxu0 %v455_v5  ;;  %v470_v15 = vpack.c.bf16 %v123_v14, %v122_v10  ;;  %v461_v16 = vpack.c.bf16 %v33_v12, %v32_v11  ;;  %v124_v17 = vld [vmem:[#allocation2 + $0xa0] sm:$0xff]  ;;  %v125_v18 = vld [vmem:[#allocation2 + $0xa8] sm:$0xff]  ;;  %v34_v19 = vld [vmem:[#allocation2 + $0x30] sm:$0xff] }
  0x17   :  { %457 = vmatprep.subr.bf16.mxu0 %v551_v0  ;;  %468 = vmatpush3.bf16.msra.mxu1 %v467_v13  ;;  %v35_v20 = vld [vmem:[#allocation2 + $0x38] sm:$0xff]  ;;  %v473_v21 = vpack.c.bf16 %v125_v18, %v124_v17  ;;  %v126_v23 = vld [vmem:[#allocation2 + $0xb0] sm:$0xff]  ;;  %v36_v26 = vld [vmem:[%s624_s0] sm:$0xff] }
  0x18   :  { %469 = vmatprep.subr.bf16.mxu1 %v551_v0  ;;  %v464_v22 = vpack.c.bf16 %v35_v20, %v34_v19  ;;  %v127_v24 = vld [vmem:[#allocation2 + $0xb8] sm:$0xff]  ;;  %v128_v27 = vld [vmem:[#allocation2 + $0xc0] sm:$0xff]  ;;  %v129_v28 = vld [vmem:[#allocation2 + $0xc8] sm:$0xff] }
  0x19   :  { %v476_v25 = vpack.c.bf16 %v127_v24, %v126_v23  ;;  %v479_v29 = vpack.c.bf16 %v129_v28, %v128_v27  ;;  %v130_v30 = vld [vmem:[#allocation2 + $0xd0] sm:$0xff]  ;;  %v131_v31 = vld [vmem:[#allocation2 + $0xd8] sm:$0xff]  ;;  %v132_v33 = vld [vmem:[#allocation2 + $0xe0] sm:$0xff] }
  0x1a   :  { %459 = vmatpush3.bf16.msra.mxu0 %v458_v7  ;;  %v482_v32 = vpack.c.bf16 %v131_v31, %v130_v30  ;;  %v133_v34 = vld [vmem:[#allocation2 + $0xe8] sm:$0xff]  ;;  %v134_v36 = vld [vmem:[#allocation2 + $0xf0] sm:$0xff]  ;;  %v135_v37 = vld [vmem:[#allocation2 + $0xf8] sm:$0xff] }
  0x1b   :  { %460 = vmatprep.subr.bf16.mxu0 %v551_v0  ;;  %471 = vmatpush3.bf16.msra.mxu1 %v470_v15  ;;  %v485_v35 = vpack.c.bf16 %v133_v34, %v132_v33  ;;  %v488_v38 = vpack.c.bf16 %v135_v37, %v134_v36  ;;  %v216_v39 = vld [vmem:[#allocation2 + $0x100] sm:$0xff]  ;;  %v217_v40 = vld [vmem:[#allocation2 + $0x108] sm:$0xff]  ;;  %v218_v41 = vld [vmem:[#allocation2 + $0x110] sm:$0xff] }
  0x1c   :  { %472 = vmatprep.subr.bf16.mxu1 %v551_v0  ;;  %v491_v42 = vpack.c.bf16 %v217_v40, %v216_v39  ;;  %v219_v43 = vld [vmem:[#allocation2 + $0x118] sm:$0xff]  ;;  %v220_v45 = vld [vmem:[#allocation2 + $0x120] sm:$0xff]  ;;  %v221_v46 = vld [vmem:[#allocation2 + $0x128] sm:$0xff] }
  0x1d   :  { %v494_v44 = vpack.c.bf16 %v219_v43, %v218_v41  ;;  %v497_v47 = vpack.c.bf16 %v221_v46, %v220_v45  ;;  %v222_v48 = vld [vmem:[#allocation2 + $0x130] sm:$0xff]  ;;  %v223_v49 = vld [vmem:[#allocation2 + $0x138] sm:$0xff]  ;;  %v224_v51 = vld [vmem:[#allocation2 + $0x140] sm:$0xff] }
  0x1e   :  { %462 = vmatpush3.bf16.msra.mxu0 %v461_v16  ;;  %v500_v50 = vpack.c.bf16 %v223_v49, %v222_v48  ;;  %v225_v52 = vld [vmem:[#allocation2 + $0x148] sm:$0xff]  ;;  %v316_v54 = vld [vmem:[%s626_s2] ss:$0 sm:$0xff]  ;;  %v226_v59 = vld [vmem:[#allocation2 + $0x150] sm:$0xff] }
  0x1f   :  { %463 = vmatprep.subr.bf16.mxu0 %v551_v0  ;;  %474 = vmatpush3.bf16.msra.mxu1 %v473_v21  ;;  %v503_v53 = vpack.c.bf16 %v225_v52, %v224_v51  ;;  %v227_v60 = vld [vmem:[#allocation2 + $0x158] sm:$0xff]  ;;  %v228_v62 = vld [vmem:[#allocation2 + $0x160] sm:$0xff]  ;;  %v229_v63 = vld [vmem:[#allocation2 + $0x168] sm:$0xff] }
  0x20   :  { %475 = vmatprep.subr.bf16.mxu1 %v551_v0  ;;  %v506_v61 = vpack.c.bf16 %v227_v60, %v226_v59  ;;  %v230_v2 = vld [vmem:[#allocation2 + $0x170] sm:$0xff]  ;;  %v231_v3 = vld [vmem:[#allocation2 + $0x178] sm:$0xff]  ;;  %v319_v5 = vld [vmem:[%s626_s2 + $0x1] ss:$0 sm:$0xff] }
  0x21   :  { %v512_v4 = vpack.c.bf16 %v231_v3, %v230_v2  ;;  %v321_v10 = vld [vmem:[%s626_s2 + $0x2] ss:$0 sm:$0xff] }
  0x22   :  { %465 = vmatpush3.bf16.msra.mxu0 %v464_v22 }
  0x23   :  { %490 = vmatprep.subr.bf16.mxu0 %v551_v0  ;;  %477 = vmatpush3.bf16.msra.mxu1 %v476_v25 }
  0x24   :  { %478 = vmatprep.subr.bf16.mxu1 %v551_v0 }
  0x25   :  { %382 = vmatmul.mubr.msk.f32.vlgmr.msra.gmra.mrb[0].mxu0 %vm44_vm1, %v36_v26 }
  0x26   :  { %451 = vmatprep.mubr.msk.f32.mxu0 %vm552_vm0, %v553_v1  ;;  %492 = vmatpush3.bf16.msra.mxu0 %v491_v42  ;;  %v509_v1 = vpack.c.bf16 %v229_v63, %v228_v62 }
  0x27   :  { %480 = vmatpush3.bf16.msra.mxu1 %v479_v29  ;;  %493 = vmatprep.subr.bf16.mxu0 %v551_v0 }
  0x28   :  { %481 = vmatprep.subr.bf16.mxu1 %v551_v0 }
  0x2a   :  { %495 = vmatpush3.bf16.msra.mxu0 %v494_v44 }
  0x2b   :  { %483 = vmatpush3.bf16.msra.mxu1 %v482_v32  ;;  %496 = vmatprep.subr.bf16.mxu0 %v551_v0 }
  0x2c   :  { %484 = vmatprep.subr.bf16.mxu1 %v551_v0 }
  0x2e   :  { %498 = vmatpush3.bf16.msra.mxu0 %v497_v47 }
  0x2f   :  { %486 = vmatpush3.bf16.msra.mxu1 %v485_v35  ;;  %499 = vmatprep.subr.bf16.mxu0 %v551_v0 }
  0x30   :  { %487 = vmatprep.subr.bf16.mxu1 %v551_v0 }
  0x32   :  { %501 = vmatpush3.bf16.msra.mxu0 %v500_v50 }
  0x33   :  { %489 = vmatpush3.bf16.msra.mxu1 %v488_v38  ;;  %502 = vmatprep.subr.bf16.mxu0 %v551_v0 }
  0x36   :  { %504 = vmatpush3.bf16.msra.mxu0 %v503_v53 }
  0x37   :  { %505 = vmatprep.subr.bf16.mxu0 %v551_v0 }
  0x3a   :  { %507 = vmatpush3.bf16.msra.mxu0 %v506_v61 }
  0x3b   :  { %508 = vmatprep.subr.bf16.mxu0 %v551_v0 }
  0x3e   :  { %510 = vmatpush3.bf16.msra.mxu0 %v509_v1 }
  0x3f   :  { %511 = vmatprep.subr.bf16.mxu0 %v551_v0 }
  0x42   :  { %513 = vmatpush3.bf16.msra.mxu0 %v512_v4 }
  0xf8   :  { %v114_v55 = vpop.f32.mrb[0].mxu0 }
  0xf9   :  { %v115_v56 = vadd.f32 %v316_v54, %v114_v55  ;;  %v383_v57 = vpop.f32.mrb[1].mxu0 }
  0xfb   :  { %520 = vtanh.f32 %v115_v56 }
 0x105   :  { %v521_v58 = vpop.eup %520 }
 0x106   :  { %417 = vmatmul.mubr.f32.vlgmr.msra.gmra.mrb[0].mxu1 %v521_v58 }
 0x1d9   :  { %v210_v6 = vpop.f32.mrb[0].mxu1 }
 0x1da   :  { %v211_v7 = vadd.f32 %v319_v5, %v210_v6  ;;  %v418_v8 = vpop.f32.mrb[1].mxu1 }
 0x1dc   :  { %522 = vtanh.f32 %v211_v7 }
 0x1e6   :  { %v523_v9 = vpop.eup %522 }
 0x1e7   :  { %452 = vmatmul.mubr.f32.vlgmr.msra.gmra.mrb[2].mxu0 %v523_v9 }
 0x2ba   :  { %v306_v11 = vpop.f32.mrb[2].mxu0 }
 0x2bb   :  { %v307_v12 = vadd.f32 %v321_v10, %v306_v11  ;;  %v453_v13 = vpop.f32.mrb[3].mxu0 }
 0x2bd   :  { %310 = vst [vmem:[%s627_s3] sm:$0xff] %v307_v12 }
 0x2be   :  { %315 = vsyncpa [#allocation3], 1 }

</bundles_post_ra>
